<compile_context>
chip_gen: v6e
topology: v6e:2x2x1
jax: 0.10.0
libtpu: 0.0.40
codegen_flags: <defaults>
</compile_context>

<pallas_src>
import functools

import jax
import jax.numpy as jnp
from jax.experimental import pallas as pl
from jax.experimental.pallas import tpu as pltpu


# ----------------------------- Pallas kernel -------------------------------


def _fused_stage_kernel(x_ref, w_in_ref, b_in_ref, wd_ref, bd_ref, wp_ref,
                        bp_ref, w_out_ref, b_out_ref, o_ref, band_ref,
                        *, num_layers, seq_len, pad, mm_dtype):
    """One batch element: in-conv -> L dilated residual layers -> out-conv.

    x_ref:     (1, dim, T)   native Conv1d layout, T on lanes
    w_in_ref:  (dim, C)          b_in_ref:  (1, C)
    wd_ref:    (L, 3, C, C)      bd_ref:    (L, 1, C)   taps: [left, center, right]
    wp_ref:    (L, C, C)         bp_ref:    (L, 1, C)
    w_out_ref: (n_cls, C)        b_out_ref: (n_cls, 1)
    o_ref:     (1, n_cls, T)  lane-dense output store (T on lanes)
    band_ref:  VMEM scratch (2*pad + T, C) f32 — zero halos + resident activation.
    """
    T = seq_len
    f32 = jnp.float32

    # ---- input 1x1 conv: contract `dim` -> (T, C), no explicit transpose ----
    x_dt = x_ref[0].astype(mm_dtype)                                 # (dim, T)
    act0 = jax.lax.dot_general(
        x_dt, w_in_ref[...],
        dimension_numbers=(((0,), (0,)), ((), ())),
        preferred_element_type=f32) + b_in_ref[...]                  # (T, C) f32
    C = act0.shape[1]

    # Zero the halos once; every layer rewrites only the center band, so the
    # halos stay zero for all dilations (d <= pad).
    band_ref[0:pad, :] = jnp.zeros((pad, C), f32)
    band_ref[pad + T:2 * pad + T, :] = jnp.zeros((pad, C), f32)
    band_ref[pad:pad + T, :] = act0                                  # resident act

    def apply_layer(l, d):
        # Taps come straight from the zero-halo band (sublane-shifted loads;
        # shift work rides the under-used XLU, not the store/VPU slots).
        center = band_ref[pad:pad + T, :]                            # (T, C) f32
        left = band_ref[pl.ds(pad - d, T), :]                        # x[t - d]
        right = band_ref[pl.ds(pad + d, T), :]                       # x[t + d]

        # Three accumulated MXU dots (no lane concat, no (T, 3C) temp).
        h = (jnp.dot(left.astype(mm_dtype), wd_ref[l, 0],
                     preferred_element_type=f32)
             + jnp.dot(center.astype(mm_dtype), wd_ref[l, 1],
                       preferred_element_type=f32)
             + jnp.dot(right.astype(mm_dtype), wd_ref[l, 2],
                       preferred_element_type=f32)
             + bd_ref[l])
        h = jnp.maximum(h, 0.0)                                      # ReLU

        # 1x1 conv + residual, updated in place on the resident band.
        # (Dropout is identity in eval mode.)
        band_ref[pad:pad + T, :] = center + (
            jnp.dot(h.astype(mm_dtype), wp_ref[l],
                    preferred_element_type=f32) + bp_ref[l])

    if num_layers <= 4:
        # Small L: Python unroll (static dilations / static slice starts).
        for l in range(num_layers):
            apply_layer(l, 2 ** l)
    else:
        # Large L: fori_loop bounds live ranges (keeps VMEM/spill pressure
        # down for the usual 10-layer refinement stage).
        def body(l, d):
            apply_layer(l, d)
            return d * jnp.int32(2)
        jax.lax.fori_loop(0, num_layers, body, jnp.int32(1))

    # ---- output 1x1 conv, produced directly as (n_cls, T): lane-dense store.
    act = band_ref[pad:pad + T, :].astype(mm_dtype)                  # (T, C)
    logits = jax.lax.dot_general(
        w_out_ref[...], act,
        dimension_numbers=(((1,), (1,)), ((), ())),
        preferred_element_type=f32)                                  # (n_cls, T)
    o_ref[0] = logits + b_out_ref[...]


# -------------------------------- wrapper -----------------------------------


def refinement_forward(x_nct, params, *, mm_dtype=jnp.float32):
    """Matches Refinement.forward. x_nct: (N, dim, T) -> (N, num_classes, T)."""
    N, dim, T = x_nct.shape
    L = len(params["layers"])
    C = params["w_in"].shape[1]
    num_classes = params["w_out"].shape[1]

    # Pack weights once (matmul operands optionally bf16; biases stay f32).
    w_in = params["w_in"].astype(mm_dtype)                           # (dim, C)
    b_in = params["b_in"]                                            # (1, C)
    wd = jnp.stack([jnp.stack([lp["w0"], lp["w1"], lp["w2"]])
                    for lp in params["layers"]]).astype(mm_dtype)    # (L, 3, C, C)
    bd = jnp.stack([lp["bd"] for lp in params["layers"]])            # (L, 1, C)
    wp = jnp.stack([lp["wp"] for lp in params["layers"]]).astype(mm_dtype)
    bp = jnp.stack([lp["bp"] for lp in params["layers"]])            # (L, 1, C)
    w_out_t = params["w_out"].T.astype(mm_dtype)                     # (n_cls, C)
    b_out = params["b_out"].reshape(num_classes, 1)                  # (n_cls, 1)

    max_d = 2 ** (L - 1)
    pad = ((max_d + 7) // 8) * 8                                     # sublane-aligned halo

    kernel = functools.partial(_fused_stage_kernel, num_layers=L,
                               seq_len=T, pad=pad, mm_dtype=mm_dtype)

    flops = 2 * N * T * (dim * C + L * (3 * C * C + C * C) + C * num_classes)
    w_item = jnp.dtype(mm_dtype).itemsize
    bytes_accessed = (4 * (N * T * dim + N * T * num_classes)
                      + w_item * (dim * C + L * 4 * C * C + C * num_classes)
                      + 4 * (C + 2 * L * C + num_classes))

    # Explicit VMEM budget: resident band + double-buffered I/O blocks +
    # weights + per-layer temporaries, with headroom.
    vmem_est = (4 * (2 * pad + T) * C                    # band
                + 2 * 4 * (dim * T + num_classes * T)    # in/out blocks (x2 buf)
                + w_item * (dim * C + L * 4 * C * C + C * num_classes)
                + 4 * (C + 2 * L * C + num_classes)
                + 6 * 4 * T * C)                         # temporaries
    vmem_limit = int(min(max(2 * vmem_est, 32 * 2 ** 20), 64 * 2 ** 20))

    out = pl.pallas_call(
        kernel,
        out_shape=jax.ShapeDtypeStruct((N, num_classes, T), jnp.float32),
        grid=(N,),
        in_specs=[
            pl.BlockSpec((1, dim, T), lambda n: (n, 0, 0)),
            pl.BlockSpec((dim, C), lambda n: (0, 0)),
            pl.BlockSpec((1, C), lambda n: (0, 0)),
            pl.BlockSpec((L, 3, C, C), lambda n: (0, 0, 0, 0)),
            pl.BlockSpec((L, 1, C), lambda n: (0, 0, 0)),
            pl.BlockSpec((L, C, C), lambda n: (0, 0, 0)),
            pl.BlockSpec((L, 1, C), lambda n: (0, 0, 0)),
            pl.BlockSpec((num_classes, C), lambda n: (0, 0)),
            pl.BlockSpec((num_classes, 1), lambda n: (0, 0)),
        ],
        out_specs=pl.BlockSpec((1, num_classes, T), lambda n: (n, 0, 0)),
        scratch_shapes=[pltpu.VMEM((2 * pad + T, C), jnp.float32)],
        compiler_params=pltpu.CompilerParams(
            dimension_semantics=("parallel",),        # batch over TCs (v7x)
            vmem_limit_bytes=vmem_limit),
        cost_estimate=pl.CostEstimate(flops=flops, transcendentals=0,
                                      bytes_accessed=int(bytes_accessed)),
    )(x_nct, w_in, b_in, wd, bd, wp, bp, w_out_t, b_out)

    return out                                                       # (N, n_cls, T)


# --------------------------- parameter creation -----------------------------


def make_params(key, num_layers, num_f_maps, dim, num_classes):
    keys = jax.random.split(key, 4 + 4 * num_layers)
    s = 0.1

    def nrm(k, shape):
        return s * jax.random.normal(k, shape, dtype=jnp.float32)

    params = {
        "w_in": nrm(keys[0], (dim, num_f_maps)),
        "b_in": nrm(keys[1], (1, num_f_maps)),
        "w_out": nrm(keys[2], (num_f_maps, num_classes)),
        "b_out": nrm(keys[3], (1, num_classes)),
        "layers": [],
    }
    for i in range(num_layers):
        k0, k1, k2, k3 = keys[4 + 4 * i: 8 + 4 * i]
        wd = nrm(k0, (3, num_f_maps, num_f_maps))      # [tap][Cin][Cout]
        params["layers"].append({
            "w0": wd[0], "w1": wd[1], "w2": wd[2],      # left / center / right
            "bd": nrm(k1, (1, num_f_maps)),
            "wp": nrm(k2, (num_f_maps, num_f_maps)),
            "bp": nrm(k3, (1, num_f_maps)),
        })
    return params


# ------------------------------ pure-JAX ref --------------------------------


def reference_forward(x_nct, params):
    x = jnp.transpose(x_nct, (0, 2, 1))

    def pw(v, w, b):
        return jnp.einsum("ntc,cd->ntd", v, w) + b

    out = pw(x, params["w_in"], params["b_in"])
    for i, lp in enumerate(params["layers"]):
        d = 2 ** i
        N, T, C = out.shape
        xp = jnp.pad(out, ((0, 0), (d, d), (0, 0)))
        h = (jnp.einsum("ntc,cd->ntd", xp[:, 0:T], lp["w0"])
             + jnp.einsum("ntc,cd->ntd", xp[:, d:d + T], lp["w1"])
             + jnp.einsum("ntc,cd->ntd", xp[:, 2 * d:2 * d + T], lp["w2"])
             + lp["bd"])
        h = jnp.maximum(h, 0.0)
        out = out + jnp.einsum("ntc,cd->ntd", h, lp["wp"]) + lp["bp"]
    out = pw(out, params["w_out"], params["b_out"])
    return jnp.transpose(out, (0, 2, 1))


# ---------------------------------- main ------------------------------------


if __name__ == "__main__":
    # Small, module-consistent shapes.
    num_layers, num_f_maps, dim, num_classes = 3, 32, 4, 6
    N, T = 2, 16

    key = jax.random.PRNGKey(0)
    k_x, k_p = jax.random.split(key)
    x = jax.random.normal(k_x, (N, dim, T), dtype=jnp.float32)   # PyTorch NCT
    params = make_params(k_p, num_layers, num_f_maps, dim, num_classes)

    y_ref = jax.block_until_ready(reference_forward(x, params))

    # f32 matmul path — exact check.
    y = jax.block_until_ready(refinement_forward(x, params))
    assert y.shape == (N, num_classes, T), y.shape
    assert jnp.allclose(y, y_ref, atol=1e-4, rtol=1e-4), (
        float(jnp.max(jnp.abs(y - y_ref))))

    # bf16 matmul-operand path (v5e/v6e/v7x MXU-native) — loose check.
    y_bf16 = jax.block_until_ready(
        refinement_forward(x, params, mm_dtype=jnp.bfloat16))
    assert y_bf16.shape == (N, num_classes, T), y_bf16.shape
    assert jnp.allclose(y_bf16, y_ref, atol=3e-2, rtol=3e-2), (
        float(jnp.max(jnp.abs(y_bf16 - y_ref))))

    print("KERNEL_OK")
</pallas_src>

<mosaic_0001>
module attributes {stable_mosaic.version = 11 : i64} {
  func.func @_fused_stage_kernel(%arg0: i32, %arg1: memref<1x4x16xf32, #tpu.memory_space<vmem>>, %arg2: memref<4x32xf32, #tpu.memory_space<vmem>>, %arg3: memref<1x32xf32, #tpu.memory_space<vmem>>, %arg4: memref<3x3x32x32xf32, #tpu.memory_space<vmem>>, %arg5: memref<3x1x32xf32, #tpu.memory_space<vmem>>, %arg6: memref<3x32x32xf32, #tpu.memory_space<vmem>>, %arg7: memref<3x1x32xf32, #tpu.memory_space<vmem>>, %arg8: memref<6x32xf32, #tpu.memory_space<vmem>>, %arg9: memref<6x1xf32, #tpu.memory_space<vmem>>, %arg10: memref<1x6x16xf32, #tpu.memory_space<vmem>>, %arg11: memref<32x32xf32, #tpu.memory_space<vmem>>) attributes {dimension_semantics = [#tpu.dimension_semantics<parallel>], iteration_bounds = array<i64: 2>, scalar_prefetch = 0 : i64, scratch_operands = 1 : i64, tpu.core_type = #tpu.core_type<tc>, window_params = [{transform_indices = @transform_0, window_bounds = array<i64: 1, 4, 16>}, {pipeline_mode = #tpu.pipeline_mode<synchronous>, transform_indices = @transform_1, window_bounds = array<i64: 4, 32>}, {pipeline_mode = #tpu.pipeline_mode<synchronous>, transform_indices = @transform_2, window_bounds = array<i64: 1, 32>}, {pipeline_mode = #tpu.pipeline_mode<synchronous>, transform_indices = @transform_3, window_bounds = array<i64: 3, 3, 32, 32>}, {pipeline_mode = #tpu.pipeline_mode<synchronous>, transform_indices = @transform_4, window_bounds = array<i64: 3, 1, 32>}, {pipeline_mode = #tpu.pipeline_mode<synchronous>, transform_indices = @transform_5, window_bounds = array<i64: 3, 32, 32>}, {pipeline_mode = #tpu.pipeline_mode<synchronous>, transform_indices = @transform_6, window_bounds = array<i64: 3, 1, 32>}, {pipeline_mode = #tpu.pipeline_mode<synchronous>, transform_indices = @transform_7, window_bounds = array<i64: 6, 32>}, {pipeline_mode = #tpu.pipeline_mode<synchronous>, transform_indices = @transform_8, window_bounds = array<i64: 6, 1>}, {transform_indices = @transform_9, window_bounds = array<i64: 1, 6, 16>}]} {
    %c0 = arith.constant 0 : index
    %c0_0 = arith.constant 0 : index
    %c0_1 = arith.constant 0 : index
    %0 = vector.load %arg1[%c0, %c0_0, %c0_1] : memref<1x4x16xf32, #tpu.memory_space<vmem>>, vector<1x4x16xf32>
    %1 = vector.shape_cast %0 : vector<1x4x16xf32> to vector<4x16xf32>
    %c0_2 = arith.constant 0 : index
    %c0_3 = arith.constant 0 : index
    %2 = vector.load %arg2[%c0_2, %c0_3] : memref<4x32xf32, #tpu.memory_space<vmem>>, vector<4x32xf32>
    %cst = arith.constant dense<0.000000e+00> : vector<16x32xf32>
    %3 = tpu.matmul %1, %2, %cst {dimension_numbers = #tpu.dot_dimension_numbers<[0], [0], [1], [1], [0, 1, 1, 1], [], []>} : vector<4x16xf32>, vector<4x32xf32>, vector<16x32xf32> -> vector<16x32xf32>
    %c0_4 = arith.constant 0 : index
    %c0_5 = arith.constant 0 : index
    %4 = vector.load %arg3[%c0_4, %c0_5] : memref<1x32xf32, #tpu.memory_space<vmem>>, vector<1x32xf32>
    %5 = vector.broadcast %4 : vector<1x32xf32> to vector<16x32xf32>
    %6 = arith.addf %3, %5 : vector<16x32xf32>
    %cst_6 = arith.constant 0.000000e+00 : f32
    %7 = vector.broadcast %cst_6 : f32 to vector<8x32xf32>
    %c0_7 = arith.constant 0 : index
    %c0_8 = arith.constant 0 : index
    %8 = vector.load %arg11[%c0_7, %c0_8] : memref<32x32xf32, #tpu.memory_space<vmem>>, vector<8x32xf32>
    tpu.vector_store %arg11[%c0_7, %c0_8], %7 {strides = array<i32>} : memref<32x32xf32, #tpu.memory_space<vmem>>, vector<8x32xf32>,
    %cst_9 = arith.constant 0.000000e+00 : f32
    %9 = vector.broadcast %cst_9 : f32 to vector<8x32xf32>
    %c24 = arith.constant 24 : index
    %c0_10 = arith.constant 0 : index
    %10 = vector.load %arg11[%c24, %c0_10] : memref<32x32xf32, #tpu.memory_space<vmem>>, vector<8x32xf32>
    tpu.vector_store %arg11[%c24, %c0_10], %9 {strides = array<i32>} : memref<32x32xf32, #tpu.memory_space<vmem>>, vector<8x32xf32>,
    %c8 = arith.constant 8 : index
    %c0_11 = arith.constant 0 : index
    %11 = vector.load %arg11[%c8, %c0_11] : memref<32x32xf32, #tpu.memory_space<vmem>>, vector<16x32xf32>
    tpu.vector_store %arg11[%c8, %c0_11], %6 {strides = array<i32>} : memref<32x32xf32, #tpu.memory_space<vmem>>, vector<16x32xf32>,
    %c8_12 = arith.constant 8 : index
    %c0_13 = arith.constant 0 : index
    %12 = vector.load %arg11[%c8_12, %c0_13] : memref<32x32xf32, #tpu.memory_space<vmem>>, vector<16x32xf32>
    %c7 = arith.constant 7 : index
    %c0_14 = arith.constant 0 : index
    %13 = vector.load %arg11[%c7, %c0_14] : memref<32x32xf32, #tpu.memory_space<vmem>>, vector<16x32xf32>
    %c9 = arith.constant 9 : index
    %c0_15 = arith.constant 0 : index
    %14 = vector.load %arg11[%c9, %c0_15] : memref<32x32xf32, #tpu.memory_space<vmem>>, vector<16x32xf32>
    %c0_16 = arith.constant 0 : index
    %c0_17 = arith.constant 0 : index
    %c0_18 = arith.constant 0 : index
    %c0_19 = arith.constant 0 : index
    %15 = vector.load %arg4[%c0_16, %c0_17, %c0_18, %c0_19] : memref<3x3x32x32xf32, #tpu.memory_space<vmem>>, vector<1x1x32x32xf32>
    %16 = vector.shape_cast %15 : vector<1x1x32x32xf32> to vector<32x32xf32>
    %cst_20 = arith.constant dense<0.000000e+00> : vector<16x32xf32>
    %17 = tpu.matmul %13, %16, %cst_20 {dimension_numbers = #tpu.dot_dimension_numbers<[1], [0], [0], [1], [0, 0, 1, 1], [], []>} : vector<16x32xf32>, vector<32x32xf32>, vector<16x32xf32> -> vector<16x32xf32>
    %c0_21 = arith.constant 0 : index
    %c1 = arith.constant 1 : index
    %c0_22 = arith.constant 0 : index
    %c0_23 = arith.constant 0 : index
    %18 = vector.load %arg4[%c0_21, %c1, %c0_22, %c0_23] : memref<3x3x32x32xf32, #tpu.memory_space<vmem>>, vector<1x1x32x32xf32>
    %19 = vector.shape_cast %18 : vector<1x1x32x32xf32> to vector<32x32xf32>
    %cst_24 = arith.constant dense<0.000000e+00> : vector<16x32xf32>
    %20 = tpu.matmul %12, %19, %cst_24 {dimension_numbers = #tpu.dot_dimension_numbers<[1], [0], [0], [1], [0, 0, 1, 1], [], []>} : vector<16x32xf32>, vector<32x32xf32>, vector<16x32xf32> -> vector<16x32xf32>
    %21 = arith.addf %17, %20 : vector<16x32xf32>
    %c0_25 = arith.constant 0 : index
    %c2 = arith.constant 2 : index
    %c0_26 = arith.constant 0 : index
    %c0_27 = arith.constant 0 : index
    %22 = vector.load %arg4[%c0_25, %c2, %c0_26, %c0_27] : memref<3x3x32x32xf32, #tpu.memory_space<vmem>>, vector<1x1x32x32xf32>
    %23 = vector.shape_cast %22 : vector<1x1x32x32xf32> to vector<32x32xf32>
    %cst_28 = arith.constant dense<0.000000e+00> : vector<16x32xf32>
    %24 = tpu.matmul %14, %23, %cst_28 {dimension_numbers = #tpu.dot_dimension_numbers<[1], [0], [0], [1], [0, 0, 1, 1], [], []>} : vector<16x32xf32>, vector<32x32xf32>, vector<16x32xf32> -> vector<16x32xf32>
    %25 = arith.addf %21, %24 : vector<16x32xf32>
    %c0_29 = arith.constant 0 : index
    %c0_30 = arith.constant 0 : index
    %c0_31 = arith.constant 0 : index
    %26 = vector.load %arg5[%c0_29, %c0_30, %c0_31] : memref<3x1x32xf32, #tpu.memory_space<vmem>>, vector<1x1x32xf32>
    %27 = vector.shape_cast %26 : vector<1x1x32xf32> to vector<1x32xf32>
    %28 = vector.broadcast %27 : vector<1x32xf32> to vector<16x32xf32>
    %29 = arith.addf %25, %28 : vector<16x32xf32>
    %cst_32 = arith.constant 0.000000e+00 : f32
    %30 = vector.broadcast %cst_32 : f32 to vector<16x32xf32>
    %31 = arith.maximumf %29, %30 : vector<16x32xf32>
    %c0_33 = arith.constant 0 : index
    %c0_34 = arith.constant 0 : index
    %c0_35 = arith.constant 0 : index
    %32 = vector.load %arg6[%c0_33, %c0_34, %c0_35] : memref<3x32x32xf32, #tpu.memory_space<vmem>>, vector<1x32x32xf32>
    %33 = vector.shape_cast %32 : vector<1x32x32xf32> to vector<32x32xf32>
    %cst_36 = arith.constant dense<0.000000e+00> : vector<16x32xf32>
    %34 = tpu.matmul %31, %33, %cst_36 {dimension_numbers = #tpu.dot_dimension_numbers<[1], [0], [0], [1], [0, 0, 1, 1], [], []>} : vector<16x32xf32>, vector<32x32xf32>, vector<16x32xf32> -> vector<16x32xf32>
    %c0_37 = arith.constant 0 : index
    %c0_38 = arith.constant 0 : index
    %c0_39 = arith.constant 0 : index
    %35 = vector.load %arg7[%c0_37, %c0_38, %c0_39] : memref<3x1x32xf32, #tpu.memory_space<vmem>>, vector<1x1x32xf32>
    %36 = vector.shape_cast %35 : vector<1x1x32xf32> to vector<1x32xf32>
    %37 = vector.broadcast %36 : vector<1x32xf32> to vector<16x32xf32>
    %38 = arith.addf %34, %37 : vector<16x32xf32>
    %39 = arith.addf %12, %38 : vector<16x32xf32>
    %c8_40 = arith.constant 8 : index
    %c0_41 = arith.constant 0 : index
    %40 = vector.load %arg11[%c8_40, %c0_41] : memref<32x32xf32, #tpu.memory_space<vmem>>, vector<16x32xf32>
    tpu.vector_store %arg11[%c8_40, %c0_41], %39 {strides = array<i32>} : memref<32x32xf32, #tpu.memory_space<vmem>>, vector<16x32xf32>,
    %c8_42 = arith.constant 8 : index
    %c0_43 = arith.constant 0 : index
    %41 = vector.load %arg11[%c8_42, %c0_43] : memref<32x32xf32, #tpu.memory_space<vmem>>, vector<16x32xf32>
    %c6 = arith.constant 6 : index
    %c0_44 = arith.constant 0 : index
    %42 = vector.load %arg11[%c6, %c0_44] : memref<32x32xf32, #tpu.memory_space<vmem>>, vector<16x32xf32>
    %c10 = arith.constant 10 : index
    %c0_45 = arith.constant 0 : index
    %43 = vector.load %arg11[%c10, %c0_45] : memref<32x32xf32, #tpu.memory_space<vmem>>, vector<16x32xf32>
    %c1_46 = arith.constant 1 : index
    %c0_47 = arith.constant 0 : index
    %c0_48 = arith.constant 0 : index
    %c0_49 = arith.constant 0 : index
    %44 = vector.load %arg4[%c1_46, %c0_47, %c0_48, %c0_49] : memref<3x3x32x32xf32, #tpu.memory_space<vmem>>, vector<1x1x32x32xf32>
    %45 = vector.shape_cast %44 : vector<1x1x32x32xf32> to vector<32x32xf32>
    %cst_50 = arith.constant dense<0.000000e+00> : vector<16x32xf32>
    %46 = tpu.matmul %42, %45, %cst_50 {dimension_numbers = #tpu.dot_dimension_numbers<[1], [0], [0], [1], [0, 0, 1, 1], [], []>} : vector<16x32xf32>, vector<32x32xf32>, vector<16x32xf32> -> vector<16x32xf32>
    %c1_51 = arith.constant 1 : index
    %c1_52 = arith.constant 1 : index
    %c0_53 = arith.constant 0 : index
    %c0_54 = arith.constant 0 : index
    %47 = vector.load %arg4[%c1_51, %c1_52, %c0_53, %c0_54] : memref<3x3x32x32xf32, #tpu.memory_space<vmem>>, vector<1x1x32x32xf32>
    %48 = vector.shape_cast %47 : vector<1x1x32x32xf32> to vector<32x32xf32>
    %cst_55 = arith.constant dense<0.000000e+00> : vector<16x32xf32>
    %49 = tpu.matmul %41, %48, %cst_55 {dimension_numbers = #tpu.dot_dimension_numbers<[1], [0], [0], [1], [0, 0, 1, 1], [], []>} : vector<16x32xf32>, vector<32x32xf32>, vector<16x32xf32> -> vector<16x32xf32>
    %50 = arith.addf %46, %49 : vector<16x32xf32>
    %c1_56 = arith.constant 1 : index
    %c2_57 = arith.constant 2 : index
    %c0_58 = arith.constant 0 : index
    %c0_59 = arith.constant 0 : index
    %51 = vector.load %arg4[%c1_56, %c2_57, %c0_58, %c0_59] : memref<3x3x32x32xf32, #tpu.memory_space<vmem>>, vector<1x1x32x32xf32>
    %52 = vector.shape_cast %51 : vector<1x1x32x32xf32> to vector<32x32xf32>
    %cst_60 = arith.constant dense<0.000000e+00> : vector<16x32xf32>
    %53 = tpu.matmul %43, %52, %cst_60 {dimension_numbers = #tpu.dot_dimension_numbers<[1], [0], [0], [1], [0, 0, 1, 1], [], []>} : vector<16x32xf32>, vector<32x32xf32>, vector<16x32xf32> -> vector<16x32xf32>
    %54 = arith.addf %50, %53 : vector<16x32xf32>
    %c1_61 = arith.constant 1 : index
    %c0_62 = arith.constant 0 : index
    %c0_63 = arith.constant 0 : index
    %55 = vector.load %arg5[%c1_61, %c0_62, %c0_63] : memref<3x1x32xf32, #tpu.memory_space<vmem>>, vector<1x1x32xf32>
    %56 = vector.shape_cast %55 : vector<1x1x32xf32> to vector<1x32xf32>
    %57 = vector.broadcast %56 : vector<1x32xf32> to vector<16x32xf32>
    %58 = arith.addf %54, %57 : vector<16x32xf32>
    %cst_64 = arith.constant 0.000000e+00 : f32
    %59 = vector.broadcast %cst_64 : f32 to vector<16x32xf32>
    %60 = arith.maximumf %58, %59 : vector<16x32xf32>
    %c1_65 = arith.constant 1 : index
    %c0_66 = arith.constant 0 : index
    %c0_67 = arith.constant 0 : index
    %61 = vector.load %arg6[%c1_65, %c0_66, %c0_67] : memref<3x32x32xf32, #tpu.memory_space<vmem>>, vector<1x32x32xf32>
    %62 = vector.shape_cast %61 : vector<1x32x32xf32> to vector<32x32xf32>
    %cst_68 = arith.constant dense<0.000000e+00> : vector<16x32xf32>
    %63 = tpu.matmul %60, %62, %cst_68 {dimension_numbers = #tpu.dot_dimension_numbers<[1], [0], [0], [1], [0, 0, 1, 1], [], []>} : vector<16x32xf32>, vector<32x32xf32>, vector<16x32xf32> -> vector<16x32xf32>
    %c1_69 = arith.constant 1 : index
    %c0_70 = arith.constant 0 : index
    %c0_71 = arith.constant 0 : index
    %64 = vector.load %arg7[%c1_69, %c0_70, %c0_71] : memref<3x1x32xf32, #tpu.memory_space<vmem>>, vector<1x1x32xf32>
    %65 = vector.shape_cast %64 : vector<1x1x32xf32> to vector<1x32xf32>
    %66 = vector.broadcast %65 : vector<1x32xf32> to vector<16x32xf32>
    %67 = arith.addf %63, %66 : vector<16x32xf32>
    %68 = arith.addf %41, %67 : vector<16x32xf32>
    %c8_72 = arith.constant 8 : index
    %c0_73 = arith.constant 0 : index
    %69 = vector.load %arg11[%c8_72, %c0_73] : memref<32x32xf32, #tpu.memory_space<vmem>>, vector<16x32xf32>
    tpu.vector_store %arg11[%c8_72, %c0_73], %68 {strides = array<i32>} : memref<32x32xf32, #tpu.memory_space<vmem>>, vector<16x32xf32>,
    %c8_74 = arith.constant 8 : index
    %c0_75 = arith.constant 0 : index
    %70 = vector.load %arg11[%c8_74, %c0_75] : memref<32x32xf32, #tpu.memory_space<vmem>>, vector<16x32xf32>
    %c4 = arith.constant 4 : index
    %c0_76 = arith.constant 0 : index
    %71 = vector.load %arg11[%c4, %c0_76] : memref<32x32xf32, #tpu.memory_space<vmem>>, vector<16x32xf32>
    %c12 = arith.constant 12 : index
    %c0_77 = arith.constant 0 : index
    %72 = vector.load %arg11[%c12, %c0_77] : memref<32x32xf32, #tpu.memory_space<vmem>>, vector<16x32xf32>
    %c2_78 = arith.constant 2 : index
    %c0_79 = arith.constant 0 : index
    %c0_80 = arith.constant 0 : index
    %c0_81 = arith.constant 0 : index
    %73 = vector.load %arg4[%c2_78, %c0_79, %c0_80, %c0_81] : memref<3x3x32x32xf32, #tpu.memory_space<vmem>>, vector<1x1x32x32xf32>
    %74 = vector.shape_cast %73 : vector<1x1x32x32xf32> to vector<32x32xf32>
    %cst_82 = arith.constant dense<0.000000e+00> : vector<16x32xf32>
    %75 = tpu.matmul %71, %74, %cst_82 {dimension_numbers = #tpu.dot_dimension_numbers<[1], [0], [0], [1], [0, 0, 1, 1], [], []>} : vector<16x32xf32>, vector<32x32xf32>, vector<16x32xf32> -> vector<16x32xf32>
    %c2_83 = arith.constant 2 : index
    %c1_84 = arith.constant 1 : index
    %c0_85 = arith.constant 0 : index
    %c0_86 = arith.constant 0 : index
    %76 = vector.load %arg4[%c2_83, %c1_84, %c0_85, %c0_86] : memref<3x3x32x32xf32, #tpu.memory_space<vmem>>, vector<1x1x32x32xf32>
    %77 = vector.shape_cast %76 : vector<1x1x32x32xf32> to vector<32x32xf32>
    %cst_87 = arith.constant dense<0.000000e+00> : vector<16x32xf32>
    %78 = tpu.matmul %70, %77, %cst_87 {dimension_numbers = #tpu.dot_dimension_numbers<[1], [0], [0], [1], [0, 0, 1, 1], [], []>} : vector<16x32xf32>, vector<32x32xf32>, vector<16x32xf32> -> vector<16x32xf32>
    %79 = arith.addf %75, %78 : vector<16x32xf32>
    %c2_88 = arith.constant 2 : index
    %c2_89 = arith.constant 2 : index
    %c0_90 = arith.constant 0 : index
    %c0_91 = arith.constant 0 : index
    %80 = vector.load %arg4[%c2_88, %c2_89, %c0_90, %c0_91] : memref<3x3x32x32xf32, #tpu.memory_space<vmem>>, vector<1x1x32x32xf32>
    %81 = vector.shape_cast %80 : vector<1x1x32x32xf32> to vector<32x32xf32>
    %cst_92 = arith.constant dense<0.000000e+00> : vector<16x32xf32>
    %82 = tpu.matmul %72, %81, %cst_92 {dimension_numbers = #tpu.dot_dimension_numbers<[1], [0], [0], [1], [0, 0, 1, 1], [], []>} : vector<16x32xf32>, vector<32x32xf32>, vector<16x32xf32> -> vector<16x32xf32>
    %83 = arith.addf %79, %82 : vector<16x32xf32>
    %c2_93 = arith.constant 2 : index
    %c0_94 = arith.constant 0 : index
    %c0_95 = arith.constant 0 : index
    %84 = vector.load %arg5[%c2_93, %c0_94, %c0_95] : memref<3x1x32xf32, #tpu.memory_space<vmem>>, vector<1x1x32xf32>
    %85 = vector.shape_cast %84 : vector<1x1x32xf32> to vector<1x32xf32>
    %86 = vector.broadcast %85 : vector<1x32xf32> to vector<16x32xf32>
    %87 = arith.addf %83, %86 : vector<16x32xf32>
    %cst_96 = arith.constant 0.000000e+00 : f32
    %88 = vector.broadcast %cst_96 : f32 to vector<16x32xf32>
    %89 = arith.maximumf %87, %88 : vector<16x32xf32>
    %c2_97 = arith.constant 2 : index
    %c0_98 = arith.constant 0 : index
    %c0_99 = arith.constant 0 : index
    %90 = vector.load %arg6[%c2_97, %c0_98, %c0_99] : memref<3x32x32xf32, #tpu.memory_space<vmem>>, vector<1x32x32xf32>
    %91 = vector.shape_cast %90 : vector<1x32x32xf32> to vector<32x32xf32>
    %cst_100 = arith.constant dense<0.000000e+00> : vector<16x32xf32>
    %92 = tpu.matmul %89, %91, %cst_100 {dimension_numbers = #tpu.dot_dimension_numbers<[1], [0], [0], [1], [0, 0, 1, 1], [], []>} : vector<16x32xf32>, vector<32x32xf32>, vector<16x32xf32> -> vector<16x32xf32>
    %c2_101 = arith.constant 2 : index
    %c0_102 = arith.constant 0 : index
    %c0_103 = arith.constant 0 : index
    %93 = vector.load %arg7[%c2_101, %c0_102, %c0_103] : memref<3x1x32xf32, #tpu.memory_space<vmem>>, vector<1x1x32xf32>
    %94 = vector.shape_cast %93 : vector<1x1x32xf32> to vector<1x32xf32>
    %95 = vector.broadcast %94 : vector<1x32xf32> to vector<16x32xf32>
    %96 = arith.addf %92, %95 : vector<16x32xf32>
    %97 = arith.addf %70, %96 : vector<16x32xf32>
    %c8_104 = arith.constant 8 : index
    %c0_105 = arith.constant 0 : index
    %98 = vector.load %arg11[%c8_104, %c0_105] : memref<32x32xf32, #tpu.memory_space<vmem>>, vector<16x32xf32>
    tpu.vector_store %arg11[%c8_104, %c0_105], %97 {strides = array<i32>} : memref<32x32xf32, #tpu.memory_space<vmem>>, vector<16x32xf32>,
    %c8_106 = arith.constant 8 : index
    %c0_107 = arith.constant 0 : index
    %99 = vector.load %arg11[%c8_106, %c0_107] : memref<32x32xf32, #tpu.memory_space<vmem>>, vector<16x32xf32>
    %c0_108 = arith.constant 0 : index
    %c0_109 = arith.constant 0 : index
    %100 = vector.load %arg8[%c0_108, %c0_109] : memref<6x32xf32, #tpu.memory_space<vmem>>, vector<6x32xf32>
    %cst_110 = arith.constant dense<0.000000e+00> : vector<6x16xf32>
    %101 = tpu.matmul %100, %99, %cst_110 {dimension_numbers = #tpu.dot_dimension_numbers<[1], [1], [0], [0], [0, 0, 1, 0], [], []>} : vector<6x32xf32>, vector<16x32xf32>, vector<6x16xf32> -> vector<6x16xf32>
    %c0_111 = arith.constant 0 : index
    %c0_112 = arith.constant 0 : index
    %102 = vector.load %arg9[%c0_111, %c0_112] : memref<6x1xf32, #tpu.memory_space<vmem>>, vector<6x1xf32>
    %103 = vector.broadcast %102 : vector<6x1xf32> to vector<6x16xf32>
    %104 = arith.addf %101, %103 : vector<6x16xf32>
    %c0_113 = arith.constant 0 : index
    %c0_114 = arith.constant 0 : index
    %c0_115 = arith.constant 0 : index
    %105 = vector.load %arg10[%c0_113, %c0_114, %c0_115] : memref<1x6x16xf32, #tpu.memory_space<vmem>>, vector<1x6x16xf32>
    %106 = vector.shape_cast %105 : vector<1x6x16xf32> to vector<6x16xf32>
    %107 = vector.shape_cast %104 : vector<6x16xf32> to vector<1x6x16xf32>
    tpu.vector_store %arg10[%c0_113, %c0_114, %c0_115], %107 {strides = array<i32>} : memref<1x6x16xf32, #tpu.memory_space<vmem>>, vector<1x6x16xf32>,
    return
  }
  func.func @transform_0(%arg0: i32) -> (i32, i32, i32) {
    %c0_i32 = arith.constant 0 : i32
    %c0_i32_0 = arith.constant 0 : i32
    %c0_i32_1 = arith.constant 0 : i32
    return %arg0, %c0_i32, %c0_i32_0 : i32, i32, i32
  }
  func.func @transform_1(%arg0: i32) -> (i32, i32) {
    %c0_i32 = arith.constant 0 : i32
    %c0_i32_0 = arith.constant 0 : i32
    %c0_i32_1 = arith.constant 0 : i32
    return %c0_i32, %c0_i32_0 : i32, i32
  }
  func.func @transform_2(%arg0: i32) -> (i32, i32) {
    %c0_i32 = arith.constant 0 : i32
    %c0_i32_0 = arith.constant 0 : i32
    %c0_i32_1 = arith.constant 0 : i32
    return %c0_i32, %c0_i32_0 : i32, i32
  }
  func.func @transform_3(%arg0: i32) -> (i32, i32, i32, i32) {
    %c0_i32 = arith.constant 0 : i32
    %c0_i32_0 = arith.constant 0 : i32
    %c0_i32_1 = arith.constant 0 : i32
    %c0_i32_2 = arith.constant 0 : i32
    %c0_i32_3 = arith.constant 0 : i32
    return %c0_i32, %c0_i32_0, %c0_i32_1, %c0_i32_2 : i32, i32, i32, i32
  }
  func.func @transform_4(%arg0: i32) -> (i32, i32, i32) {
    %c0_i32 = arith.constant 0 : i32
    %c0_i32_0 = arith.constant 0 : i32
    %c0_i32_1 = arith.constant 0 : i32
    %c0_i32_2 = arith.constant 0 : i32
    return %c0_i32, %c0_i32_0, %c0_i32_1 : i32, i32, i32
  }
  func.func @transform_5(%arg0: i32) -> (i32, i32, i32) {
    %c0_i32 = arith.constant 0 : i32
    %c0_i32_0 = arith.constant 0 : i32
    %c0_i32_1 = arith.constant 0 : i32
    %c0_i32_2 = arith.constant 0 : i32
    return %c0_i32, %c0_i32_0, %c0_i32_1 : i32, i32, i32
  }
  func.func @transform_6(%arg0: i32) -> (i32, i32, i32) {
    %c0_i32 = arith.constant 0 : i32
    %c0_i32_0 = arith.constant 0 : i32
    %c0_i32_1 = arith.constant 0 : i32
    %c0_i32_2 = arith.constant 0 : i32
    return %c0_i32, %c0_i32_0, %c0_i32_1 : i32, i32, i32
  }
  func.func @transform_7(%arg0: i32) -> (i32, i32) {
    %c0_i32 = arith.constant 0 : i32
    %c0_i32_0 = arith.constant 0 : i32
    %c0_i32_1 = arith.constant 0 : i32
    return %c0_i32, %c0_i32_0 : i32, i32
  }
  func.func @transform_8(%arg0: i32) -> (i32, i32) {
    %c0_i32 = arith.constant 0 : i32
    %c0_i32_0 = arith.constant 0 : i32
    %c0_i32_1 = arith.constant 0 : i32
    return %c0_i32, %c0_i32_0 : i32, i32
  }
  func.func @transform_9(%arg0: i32) -> (i32, i32, i32) {
    %c0_i32 = arith.constant 0 : i32
    %c0_i32_0 = arith.constant 0 : i32
    %c0_i32_1 = arith.constant 0 : i32
    return %arg0, %c0_i32, %c0_i32_0 : i32, i32, i32
  }
}

</mosaic_0001>

<bundles_post_ra>
// kernel: tpu_custom_call.1
= control target key start
LH: loop header
LB: loop body
LE: loop exit
PB: predicated region body
PF: predicated region fallthrough
CT: control target
= control target key end

     0   :  { %14 = vsyncpa [#allocation4], 0  ;;  %s2589_s0 = inlined_call_operand.vmem [shape: f32[2,4,16], index: 0, kind: input, shape index: {}]   ;;  %s2590_s1 = inlined_call_operand.hbm [shape: f32[4,32], index: 1, kind: input, shape index: {}]   ;;  %s2591_s2 = inlined_call_operand.hbm [shape: f32[1,32], index: 2, kind: input, shape index: {}]   ;;  %s2592_s3 = inlined_call_operand.hbm [shape: f32[3,3,32,32], index: 3, kind: input, shape index: {}]   ;;  %s2593_s4 = inlined_call_operand.hbm [shape: f32[3,1,32], index: 4, kind: input, shape index: {}]   ;;  %s2594_s5 = inlined_call_operand.hbm [shape: f32[3,32,32], index: 5, kind: input, shape index: {}]   ;;  %s2595_s6 = inlined_call_operand.vmem [shape: f32[3,1,32], index: 6, kind: input, shape index: {}]   ;;  %s2596_s7 = inlined_call_operand.vmem [shape: f32[6,32], index: 7, kind: input, shape index: {}]   ;;  %s2597_s8 = inlined_call_operand.vmem [shape: f32[6,1], index: 8, kind: input, shape index: {}]   ;;  %s2598_s9 = inlined_call_operand.vmem [shape: f32[2,6,16], index: 9, kind: output, shape index: {}]  }
   0x1   :  { %15 = vsyncpa [#allocation6], 0 }
   0x2   :  { %16 = vsyncpa [#allocation9], 0  ;;  %s2401_s30 = smov 0  }
   0x3 LB: > { %s2339_s10 = smov [#allocation5]   ;;  %s2407_s12 = sadd.s32 4294967295, %s2337_s30   ;;  %s2337_s30 = sphi %s2401_s30, %s22_s30  }
   0x4   : > { %s271_s11 = sshll.u32 %s2339_s10, 4  ;;  %p1844_p0 = scmp.ge.s32.totalorder %s2337_s30, 1  ;;  %s272_s11 = int_to_ptr.vmem [resolvable:$true] %s271_s11 }
   0x5   : > { %p247_p1 = scmp.lt.s32.totalorder %s2337_s30, 3  ;;  %p2158_p2 = scmp.eq.s32.totalorder %s2407_s12, 0 }
   0x6   : > { %s2340_s14 = smov [#allocation8]   ;;  %s2341_s17 = smov [#allocation3]  }
   0x7   : > { %p2412_p3 = pnand %p1844_p0, %p247_p1  ;;  %s294_s15 = sshll.u32 %s2340_s14, 4  ;;  %s2418_s15 = int_to_ptr.vmem [resolvable:$true] %s294_s15 }
   0x8   : > { %s260_s18 = sshll.u32 %s2341_s17, 4  ;;  %s2342_s19 = smov [#allocation7]   ;;  %s2426_s18 = int_to_ptr.vmem [resolvable:$true] %s260_s18 }
   0x9   : > { %p2142_p4 = pneg %p2412_p3  ;;  %s2428_s20 = sshll.u32 %s2342_s19, 4  ;;  %s282_s20 = int_to_ptr.vmem [resolvable:$true] %s2428_s20 }
   0xa   : > { %s2200_s22 = scalar_lea.vmem %s272_s11, 16  ;;  %s2207_s23 = scalar_lea.vmem %s272_s11, 32 }
   0xb   : > { %p2422_p5 = pnand %p2158_p2, %p2142_p4  ;;  %p2201_p7 = scmp.ne.s32.totalorder %s272_s11, %s2200_s22 }
   0xc   : > { %p2208_p10 = scmp.lt.s32.totalorder %s272_s11, %s272_s11  ;;  %p2209_p11 = scmp.lt.s32.totalorder %s2207_s23, %s2200_s22 }
   0xd   : > { %p2432_p6 = pneg %p2422_p5 }
   0xe   : > { %p2210_p12 = por %p2209_p11, %p2208_p10 }
   0xf   : > { %p2203_p8 = pnand %p2201_p7, %p2432_p6 }
  0x11   : > { %p2204_p9 = pneg %p2203_p8 }
  0x13   : > { %p2211_p13 = pnand %p2210_p12, %p2204_p9 }
  0x15   : > { %2214 = shalt.err (!%p2211_p13)
}
  0x16   : > { %2148 = dma.hbm_to_vmem [thread:$0]  (!%p2422_p5), %s2591_s2, 16, %s272_s11, [#allocation6]  }
  0x17   : > { %s2226_s26 = scalar_lea.vmem %s2418_s15, 48  ;;  %s2233_s27 = scalar_lea.vmem %s2418_s15, 64 }
  0x18   : > { %p2227_p0 = scmp.ne.s32.totalorder %s2418_s15, %s2226_s26  ;;  %p2234_p7 = scmp.lt.s32.totalorder %s2418_s15, %s2418_s15 }
  0x19   : > { %p2235_p8 = scmp.lt.s32.totalorder %s2233_s27, %s2226_s26 }
  0x1a   : > { %p2229_p1 = pnand %p2227_p0, %p2432_p6 }
  0x1b   : > { %p2236_p9 = por %p2235_p8, %p2234_p7 }
  0x1c   : > { %p2230_p4 = pneg %p2229_p1 }
  0x1e   : > { %p2237_p10 = pnand %p2236_p9, %p2230_p4 }
  0x20   : > { %2240 = shalt.err (!%p2237_p10)
}
  0x21   : > { %s2343_s28 = smov 16   ;;  %s2344_s29 = smov 1  }
  0x22   : > { %2154 = dma.hbm_to_vmem [thread:$0]  (!%p2422_p5), %s2593_s4, 48, %s2418_s15, [#allocation9], %s2343_s28, %s2343_s28, %s2344_s29  }
  0x23   : > { %s2252_s14 = scalar_lea.vmem %s2426_s18, 64  ;;  %p2260_p0 = scmp.lt.s32.totalorder %s2426_s18, %s2426_s18 }
  0x24   : > { %p2253_p11 = scmp.ne.s32.totalorder %s2426_s18, %s2252_s14  ;;  %p2261_p1 = scmp.lt.s32.totalorder %s2252_s14, %s2252_s14 }
  0x26   : > { %p2255_p12 = pnand %p2253_p11, %p2432_p6  ;;  %p2262_p4 = por %p2261_p1, %p2260_p0 }
  0x28   : > { %p2256_p13 = pneg %p2255_p12 }
  0x2a   : > { %p2263_p7 = pnand %p2262_p4, %p2256_p13 }
  0x2c   : > { %2266 = shalt.err (!%p2263_p7)
}
  0x2d   : > { %2145 = dma.hbm_to_vmem [thread:$0]  (!%p2422_p5), %s2590_s1, 64, %s2426_s18, [#allocation4]  }
  0x2e   : > { %s2278_s15 = scalar_lea.vmem %s282_s20, 4608  ;;  %p2286_p11 = scmp.lt.s32.totalorder %s282_s20, %s282_s20 }
  0x2f   : > { %p2279_p8 = scmp.ne.s32.totalorder %s282_s20, %s2278_s15  ;;  %p2287_p12 = scmp.lt.s32.totalorder %s2278_s15, %s2278_s15 }
  0x31   : > { %p2281_p9 = pnand %p2279_p8, %p2432_p6  ;;  %p2288_p0 = por %p2287_p12, %p2286_p11 }
  0x33   : > { %p2282_p10 = pneg %p2281_p9 }
  0x35   : > { %p2289_p13 = pnand %p2288_p0, %p2282_p10 }
  0x37   : > { %2292 = shalt.err (!%p2289_p13)
}
  0x38   : > { %s2345_s22 = smov 128   ;;  %s2346_s23 = smov 8  }
  0x39   : > { %2151 = dma.hbm_to_vmem [thread:$0]  (!%p2422_p5), %s2592_s3, 4608, %s282_s20, [#allocation6], %s2345_s22, %s2345_s22, %s2346_s23  }
  0x3a   : > { %s2347_s18 = smov [#allocation10]  }
  0x3b   : > { %s307_s26 = sshll.u32 %s2347_s18, 4  ;;  %s308_s26 = int_to_ptr.vmem [resolvable:$true] %s307_s26 }
  0x3c   : > { %s2304_s27 = scalar_lea.vmem %s308_s26, 1536  ;;  %p2312_p8 = scmp.lt.s32.totalorder %s308_s26, %s308_s26 }
  0x3d   : > { %p2305_p1 = scmp.ne.s32.totalorder %s308_s26, %s2304_s27  ;;  %p2313_p9 = scmp.lt.s32.totalorder %s2304_s27, %s2304_s27 }
  0x3f   : > { %p2307_p4 = pnand %p2305_p1, %p2432_p6  ;;  %p2314_p10 = por %p2313_p9, %p2312_p8 }
  0x41   : > { %p2308_p7 = pneg %p2307_p4 }
  0x43   : > { %p2315_p11 = pnand %p2314_p10, %p2308_p7 }
  0x45   : > { %2318 = shalt.err (!%p2315_p11)
}
  0x46   : > { %2157 = dma.hbm_to_vmem [thread:$0]  (!%p2422_p5), %s2594_s5, 1536, %s308_s26, [#allocation9], %s2345_s22, %s2345_s22, %s2346_s23  }
  0x47   : > { %339 = sbr.rel (%p2412_p3) target bundleno = 1876 (0x754), region = 56 }
  0x4c   : > { %2324 = dma.done.wait (%p2158_p2), [#allocation4], 64  }
  0x4d   : > { %2326 = vsyncadd (%p2158_p2), [#allocation4], 4294967232 }
  0x4e   : > { %2328 = dma.done.wait (%p2158_p2), [#allocation6], 4624  }
  0x4f   : > { %2330 = vsyncadd (%p2158_p2), [#allocation6], 4294962672 }
  0x50   : > { %2332 = dma.done.wait (%p2158_p2), [#allocation9], 1584  }
  0x51   : > { %2334 = vsyncadd (%p2158_p2), [#allocation9], 4294965712  ;;  %p389_p3 = scmp.lt.s32.totalorder %s2407_s12, 1  ;;  %vm445_vm0 = vcmask 1043456   ;;  %v398_v1 = vld [vmem:[#allocation3] sm:$0xf] }
  0x52   : > { %1978 = vmatprep.subr.msk.mxu0 %vm445_vm0, %v398_v1  ;;  %vm438_vm1 = vcmask 31744   ;;  %vm524_vm2 = vcmask 261120   ;;  %v2348_v4 = vmov 0.0   ;;  %v543_v5 = vld [vmem:[#allocation7 + $0x38] sm:$0xff]  ;;  %v542_v7 = vld [vmem:[#allocation7 + $0x30] sm:$0xff]  ;;  %v541_v9 = vld [vmem:[#allocation7 + $0x28] sm:$0xff] }
  0x53   : > { %s2603_s12 = smov (!%p389_p3, %s2407_s12), 1  ;;  %1979 = vmatpush3.msk.msra.mxu0 %vm445_vm0, %v398_v1  ;;  %525 = vst.msk [vmem:[#allocation2] sm:$0xff] %vm524_vm2, %v2348_v4  ;;  %526 = vst.msk [vmem:[#allocation2 + $0x18] sm:$0xff] %vm524_vm2, %v2348_v4  ;;  %1983 = vmatprep.subr.mxu1 %v543_v5  ;;  %v538_v6 = vld [vmem:[#allocation7 + $0x18] sm:$0xff]  ;;  %v537_v8 = vld [vmem:[#allocation7 + $0x10] sm:$0xff]  ;;  %vm2349_vm3 = vmmov 0  }
  0x54   : > { %s1857_s13 = sshll.u32 %s2603_s12, 2  ;;  %1984 = vmatpush3.msra.mxu1 %v543_v5  ;;  %1994 = vmatprep.subr.mxu0 %v538_v6  ;;  %v536_v10 = vld [vmem:[#allocation7 + $0x8] sm:$0xff]  ;;  %v540_v11 = vld [vmem:[#allocation7 + $0x20] sm:$0xff]  ;;  %v710_v13 = vld [vmem:[#allocation7 + $0x58] sm:$0xff]  ;;  %s1858_s18 = sshll.u32 %s2603_s12, 3  ;;  %vm1737_vm4 = vcmask 128000  }
  0x55   : > { %s392_s21 = scalar_lea.vmem %s2589_s0, %s1857_s13  ;;  %1985 = vmatprep.subr.mxu1 %v542_v7  ;;  %v535_v12 = vld [vmem:[#allocation7] sm:$0xff]  ;;  %v1859_v14 = vld [vmem:[#allocation5] ss:$0 sm:$0xff]  ;;  %v709_v23 = vld [vmem:[#allocation7 + $0x50] sm:$0xff]  ;;  %s396_s28 = scalar_lea.vmem %s2598_s9, %s1858_s18 }
  0x56   : > { %v397_v0 = vld [vmem:[%s392_s21] sm:$0xf]  ;;  %1986 = vmatpush3.msra.mxu1 %v542_v7  ;;  %v708_v25 = vld [vmem:[#allocation7 + $0x48] sm:$0xff]  ;;  %v707_v26 = vld [vmem:[#allocation7 + $0x40] sm:$0xff] }
  0x57   : > { %406 = vxpose.xlu0.b32.start.end [1/1] (short) (narrow) %v397_v0, 16  ;;  %1987 = vmatprep.subr.mxu1 %v541_v9  ;;  %v808_v28 = vld [vmem:[#allocation10 + $0x18] sm:$0xff]  ;;  %v807_v29 = vld [vmem:[#allocation10 + $0x10] sm:$0xff]  ;;  %v806_v30 = vld [vmem:[#allocation10 + $0x8] sm:$0xff] }
  0x58   : > { %1988 = vmatpush3.msra.mxu1 %v541_v9  ;;  %v805_v31 = vld [vmem:[#allocation10] sm:$0xff]  ;;  %v1869_v40 = vld [vmem:[#allocation8] ss:$0 sm:$0xff]  ;;  %v916_v47 = vld [vmem:[#allocation7 + $0x98] sm:$0xff] }
  0x59   : > { %1989 = vmatprep.subr.mxu1 %v540_v11  ;;  %v911_v48 = vld [vmem:[#allocation7 + $0x78] sm:$0xff]  ;;  %v915_v49 = vld [vmem:[#allocation7 + $0x90] sm:$0xff]  ;;  %v914_v51 = vld [vmem:[#allocation7 + $0x88] sm:$0xff] }
  0x5a   : > { %1990 = vmatpush3.msra.mxu1 %v540_v11  ;;  %v910_v50 = vld [vmem:[#allocation7 + $0x70] sm:$0xff]  ;;  %v909_v52 = vld [vmem:[#allocation7 + $0x68] sm:$0xff]  ;;  %v913_v53 = vld [vmem:[#allocation7 + $0x80] sm:$0xff] }
  0x5b   : > { %2005 = vmatprep.subr.mxu1 %v710_v13  ;;  %v908_v54 = vld [vmem:[#allocation7 + $0x60] sm:$0xff]  ;;  %v1083_v55 = vld [vmem:[#allocation7 + $0xb8] sm:$0xff]  ;;  %v1181_v11 = vld [vmem:[#allocation10 + $0x28] sm:$0xff] }
  0x5c   : > { %v1870_v56 = vld [vmem:[%s2595_s6] ss:$0 sm:$0xff]  ;;  %v1080_v7 = vld [vmem:[#allocation7 + $0xa0] sm:$0xff] }
  0x5d   : > { %v1183_v9 = vld [vmem:[#allocation10 + $0x38] sm:$0xff] }
  0xd3   : > { %v422_v2 = vpop.trf.xlu0 }
  0xd4   : > { %1980 = vmatprep.mubr.msk.f32.mxu0 %vm438_vm1, %v422_v2 }
  0xd7   : > { %v423_v3 = vpop.trf.xlu0 }
  0xd8   : > { %1981 = vmatmul.mubr.msk.f32.vlgmr.msra.gmra.mxu0 %vm438_vm1, %v423_v3  ;;  %v1082_v3 = vld [vmem:[#allocation7 + $0xb0] sm:$0xff] }
  0xd9   : > { %1995 = vmatpush3.msra.mxu0 %v538_v6  ;;  %v1081_v6 = vld [vmem:[#allocation7 + $0xa8] sm:$0xff] }
  0xda   : > { %1996 = vmatprep.subr.mxu0 %v537_v8 }
  0xdb   : > { %1997 = vmatpush3.msra.mxu0 %v537_v8 }
  0xdc   : > { %1998 = vmatprep.subr.mxu0 %v536_v10 }
  0xdd   : > { %1999 = vmatpush3.msra.mxu0 %v536_v10  ;;  %v1182_v10 = vld [vmem:[#allocation10 + $0x30] sm:$0xff] }
  0xde   : > { %2000 = vmatprep.subr.mxu0 %v535_v12 }
  0xdf   : > { %2001 = vmatpush3.msra.mxu0 %v535_v12  ;;  %v1180_v12 = vld [vmem:[#allocation10 + $0x20] sm:$0xff] }
  0xe0   : > { %2016 = vmatprep.subr.mxu0 %v808_v28 }
 0x198   : > { %v1982_v15 = vpop.f32.mrf.mxu0 }
 0x199   : > { %v521_v16 = vadd.f32 %v1982_v15, %v1859_v14 }
 0x19a   : > { %v515_v17 = vpop.f32.mrf.mxu0 }
 0x19b   : > { %528 = vst.msk [vmem:[#allocation2 + $0x10] sm:$0xff] %vm524_vm2, %v521_v16  ;;  %v516_v18 = vadd.f32 %v1859_v14, %v515_v17 }
 0x19d   : > { %527 = vst.msk [vmem:[#allocation2 + $0x8] sm:$0xff] %vm524_vm2, %v516_v18 }
 0x1a2   : > { %v2516_v22 = vld [vmem:[#allocation2 + $0x10] sm:$0xff] }
 0x1a3   : > { %v534_v27 = vld [vmem:[#allocation2 + $0x11] sm:$0xff] }
 0x1a4   : > { %v2511_v19 = vld [vmem:[#allocation2 + $0x8] sm:$0xff] }
 0x1a5   : > { %v531_v20 = vld [vmem:[#allocation2 + $0x7] sm:$0xff]  ;;  %v532_v21 = vld [vmem:[#allocation2 + $0xf] sm:$0xff]  ;;  %1991 = vmatprep.mubr.msk.f32.mxu1 %vm524_vm2, %v2511_v19 }
 0x1a6   : > { %2002 = vmatprep.mubr.msk.f32.mxu0 %vm524_vm2, %v531_v20  ;;  %1992 = vmatmul.mubr.msk.f32.vlgmr.msra.gmra.mxu1 %vm524_vm2, %v2516_v22  ;;  %v533_v24 = vld [vmem:[#allocation2 + $0x9] sm:$0xff] }
 0x1a7   : > { %2003 = vmatmul.mubr.msk.f32.vlgmr.msra.gmra.mxu0 %vm524_vm2, %v532_v21  ;;  %2006 = vmatpush3.msra.mxu1 %v710_v13  ;;  %v1879_v21 = vld [vmem:[#allocation8 + $0x1] ss:$0 sm:$0xff] }
 0x1a8   : > { %2013 = vmatprep.mubr.msk.f32.mxu1 %vm524_vm2, %v533_v24  ;;  %2007 = vmatprep.subr.mxu1 %v709_v23 }
 0x1a9   : > { %2008 = vmatpush3.msra.mxu1 %v709_v23  ;;  %2017 = vmatpush3.msra.mxu0 %v808_v28  ;;  %v1291_v28 = vld [vmem:[#allocation7 + $0xf8] sm:$0xff] }
 0x1aa   : > { %2009 = vmatprep.subr.mxu1 %v708_v25  ;;  %2018 = vmatprep.subr.mxu0 %v807_v29 }
 0x1ab   : > { %2010 = vmatpush3.msra.mxu1 %v708_v25  ;;  %2019 = vmatpush3.msra.mxu0 %v807_v29  ;;  %v1286_v29 = vld [vmem:[#allocation7 + $0xd8] sm:$0xff] }
 0x1ac   : > { %2011 = vmatprep.subr.mxu1 %v707_v26  ;;  %2020 = vmatprep.subr.mxu0 %v806_v30 }
 0x1ad   : > { %2012 = vmatpush3.msra.mxu1 %v707_v26  ;;  %2021 = vmatpush3.msra.mxu0 %v806_v30  ;;  %v1290_v30 = vld [vmem:[#allocation7 + $0xf0] sm:$0xff] }
 0x1ae   : > { %2014 = vmatmul.mubr.msk.f32.vlgmr.msra.gmra.mxu1 %vm524_vm2, %v534_v27  ;;  %2022 = vmatprep.subr.mxu0 %v805_v31 }
 0x1af   : > { %2023 = vmatpush3.msra.mxu0 %v805_v31  ;;  %2027 = vmatprep.subr.mxu1 %v916_v47  ;;  %v1285_v31 = vld [vmem:[#allocation7 + $0xd0] sm:$0xff] }
 0x1b0   : > { %2028 = vmatpush3.msra.mxu1 %v916_v47  ;;  %2038 = vmatprep.subr.mxu0 %v911_v48 }
 0x1b1   : > { %2029 = vmatprep.subr.mxu1 %v915_v49 }
 0x1b2   : > { %2030 = vmatpush3.msra.mxu1 %v915_v49  ;;  %v1456_v49 = vld [vmem:[#allocation7 + $0x108] sm:$0xff] }
 0x1b3   : > { %2031 = vmatprep.subr.mxu1 %v914_v51 }
 0x1b4   : > { %2032 = vmatpush3.msra.mxu1 %v914_v51 }
 0x1b5   : > { %2033 = vmatprep.subr.mxu1 %v913_v53 }
 0x1b6   : > { %2034 = vmatpush3.msra.mxu1 %v913_v53  ;;  %v1554_v53 = vld [vmem:[#allocation10 + $0x50] sm:$0xff] }
 0x1b7   : > { %2049 = vmatprep.subr.mxu1 %v1083_v55 }
 0x266   : > { %v1993_v32 = vpop.f32.mrf.mxu1 }
 0x267   : > { %v2004_v33 = vpop.f32.mrf.mxu0 }
 0x268   : > { %v616_v34 = vpop.f32.mrf.mxu1  ;;  %v703_v36 = vadd.f32 %v2004_v33, %v1993_v32  ;;  %v1289_v32 = vld [vmem:[#allocation7 + $0xe8] sm:$0xff] }
 0x269   : > { %v697_v35 = vpop.f32.mrf.mxu0  ;;  %v1284_v33 = vld [vmem:[#allocation7 + $0xc8] sm:$0xff] }
 0x26a   : > { %v698_v38 = vadd.f32 %v697_v35, %v616_v34  ;;  %v1288_v34 = vld [vmem:[#allocation7 + $0xe0] sm:$0xff] }
 0x26b   : > { %v1283_v35 = vld [vmem:[#allocation7 + $0xc0] sm:$0xff] }
 0x26e   : > { %v2015_v37 = vpop.f32.mrf.mxu1 }
 0x26f   : > { %v793_v39 = vadd.f32 %v2015_v37, %v703_v36  ;;  %v1458_v36 = vld [vmem:[#allocation7 + $0x118] sm:$0xff] }
 0x270   : > { %v783_v41 = vpop.f32.mrf.mxu1  ;;  %v1881_v37 = vld [vmem:[%s2595_s6 + $0x1] ss:$0 sm:$0xff] }
 0x271   : > { %v792_v42 = vadd.f32 %v783_v41, %v698_v38  ;;  %v802_v43 = vadd.f32 %v1869_v40, %v793_v39 }
 0x273   : > { %v801_v44 = vadd.f32 %v1869_v40, %v792_v42  ;;  %v804_v46 = vmax.f32 %v802_v43, 0.0 }
 0x275   : > { %v803_v45 = vmax.f32 %v801_v44, 0.0 }
 0x277   : > { %2024 = vmatprep.mubr.msk.f32.mxu0 %vm524_vm2, %v803_v45 }
 0x278   : > { %2025 = vmatmul.mubr.msk.f32.vlgmr.msra.gmra.mxu0 %vm524_vm2, %v804_v46 }
 0x279   : > { %2039 = vmatpush3.msra.mxu0 %v911_v48  ;;  %v1457_v48 = vld [vmem:[#allocation7 + $0x110] sm:$0xff] }
 0x27a   : > { %2040 = vmatprep.subr.mxu0 %v910_v50 }
 0x27b   : > { %2041 = vmatpush3.msra.mxu0 %v910_v50  ;;  %v1455_v50 = vld [vmem:[#allocation7 + $0x100] sm:$0xff] }
 0x27c   : > { %2042 = vmatprep.subr.mxu0 %v909_v52 }
 0x27d   : > { %2043 = vmatpush3.msra.mxu0 %v909_v52  ;;  %v1555_v52 = vld [vmem:[#allocation10 + $0x58] sm:$0xff] }
 0x27e   : > { %2044 = vmatprep.subr.mxu0 %v908_v54 }
 0x27f   : > { %2045 = vmatpush3.msra.mxu0 %v908_v54  ;;  %v1553_v54 = vld [vmem:[#allocation10 + $0x48] sm:$0xff] }
 0x280   : > { %2060 = vmatprep.subr.mxu0 %v1183_v9 }
 0x338   : > { %v2026_v57 = vpop.f32.mrf.mxu0 }
 0x339   : > { %v894_v58 = vadd.f32 %v2026_v57, %v1870_v56 }
 0x33a   : > { %v888_v59 = vpop.f32.mrf.mxu0 }
 0x33b   : > { %v898_v60 = vadd.f32 %v894_v58, %v2516_v22  ;;  %v889_v61 = vadd.f32 %v1870_v56, %v888_v59 }
 0x33d   : > { %900 = vst.msk [vmem:[#allocation2 + $0x10] sm:$0xff] %vm524_vm2, %v898_v60  ;;  %v897_v62 = vadd.f32 %v889_v61, %v2511_v19 }
 0x33f   : > { %899 = vst.msk [vmem:[#allocation2 + $0x8] sm:$0xff] %vm524_vm2, %v897_v62 }
 0x344   : > { %v2537_v2 = vld [vmem:[#allocation2 + $0x10] sm:$0xff] }
 0x345   : > { %v906_v8 = vld [vmem:[#allocation2 + $0x12] sm:$0xff] }
 0x346   : > { %v2532_v63 = vld [vmem:[#allocation2 + $0x8] sm:$0xff] }
 0x347   : > { %v903_v0 = vld [vmem:[#allocation2 + $0x6] sm:$0xff]  ;;  %v904_v1 = vld [vmem:[#allocation2 + $0xe] sm:$0xff]  ;;  %2035 = vmatprep.mubr.msk.f32.mxu1 %vm524_vm2, %v2532_v63 }
 0x348   : > { %2046 = vmatprep.mubr.msk.f32.mxu0 %vm524_vm2, %v903_v0  ;;  %2036 = vmatmul.mubr.msk.f32.vlgmr.msra.gmra.mxu1 %vm524_vm2, %v2537_v2  ;;  %v905_v5 = vld [vmem:[#allocation2 + $0xa] sm:$0xff]  ;;  %v1890_v0 = vld [vmem:[#allocation8 + $0x2] ss:$0 sm:$0xff] }
 0x349   : > { %2047 = vmatmul.mubr.msk.f32.vlgmr.msra.gmra.mxu0 %vm524_vm2, %v904_v1  ;;  %2050 = vmatpush3.msra.mxu1 %v1083_v55  ;;  %v1552_v55 = vld [vmem:[#allocation10 + $0x40] sm:$0xff] }
 0x34a   : > { %2057 = vmatprep.mubr.msk.f32.mxu1 %vm524_vm2, %v905_v5  ;;  %2051 = vmatprep.subr.mxu1 %v1082_v3 }
 0x34b   : > { %2052 = vmatpush3.msra.mxu1 %v1082_v3  ;;  %2061 = vmatpush3.msra.mxu0 %v1183_v9  ;;  %v2350_v9 = vmov 0  }
 0x34c   : > { %2053 = vmatprep.subr.mxu1 %v1081_v6  ;;  %2062 = vmatprep.subr.mxu0 %v1182_v10 }
 0x34d   : > { %2054 = vmatpush3.msra.mxu1 %v1081_v6  ;;  %2063 = vmatpush3.msra.mxu0 %v1182_v10  ;;  %v1892_v10 = vld [vmem:[%s2595_s6 + $0x2] ss:$0 sm:$0xff] }
 0x34e   : > { %2055 = vmatprep.subr.mxu1 %v1080_v7  ;;  %2064 = vmatprep.subr.mxu0 %v1181_v11 }
 0x34f   : > { %2056 = vmatpush3.msra.mxu1 %v1080_v7  ;;  %2065 = vmatpush3.msra.mxu0 %v1181_v11 }
 0x350   : > { %2058 = vmatmul.mubr.msk.f32.vlgmr.msra.gmra.mxu1 %vm524_vm2, %v906_v8  ;;  %2066 = vmatprep.subr.mxu0 %v1180_v12  ;;  %v1652_v8 = vld [vmem:[%s2597_s8] sm:$0x3f] }
 0x351   : > { %2067 = vmatpush3.msra.mxu0 %v1180_v12  ;;  %2071 = vmatprep.subr.mxu1 %v1291_v28 }
 0x352   : > { %2072 = vmatpush3.msra.mxu1 %v1291_v28  ;;  %2082 = vmatprep.subr.mxu0 %v1286_v29 }
 0x353   : > { %2073 = vmatprep.subr.mxu1 %v1290_v30  ;;  %2188 = vset.pattern.permute.xlu0 %v2350_v9 }
 0x354   : > { %2074 = vmatpush3.msra.mxu1 %v1290_v30  ;;  %1655 = vperm.xlu0 %2188, %v1652_v8  }
 0x355   : > { %2075 = vmatprep.subr.mxu1 %v1289_v32 }
 0x356   : > { %2076 = vmatpush3.msra.mxu1 %v1289_v32 }
 0x357   : > { %2077 = vmatprep.subr.mxu1 %v1288_v34 }
 0x358   : > { %2078 = vmatpush3.msra.mxu1 %v1288_v34 }
 0x359   : > { %2093 = vmatprep.subr.mxu1 %v1458_v36 }
 0x408   : > { %v2037_v13 = vpop.f32.mrf.mxu1 }
 0x409   : > { %v2048_v14 = vpop.f32.mrf.mxu0 }
 0x40a   : > { %v989_v15 = vpop.f32.mrf.mxu1  ;;  %v1076_v17 = vadd.f32 %v2048_v14, %v2037_v13 }
 0x40b   : > { %v1070_v16 = vpop.f32.mrf.mxu0 }
 0x40c   : > { %v1071_v19 = vadd.f32 %v1070_v16, %v989_v15 }
 0x410   : > { %v2059_v18 = vpop.f32.mrf.mxu1 }
 0x411   : > { %v1166_v20 = vadd.f32 %v2059_v18, %v1076_v17 }
 0x412   : > { %v1156_v22 = vpop.f32.mrf.mxu1 }
 0x413   : > { %v1165_v23 = vadd.f32 %v1156_v22, %v1071_v19  ;;  %v1176_v24 = vadd.f32 %v1879_v21, %v1166_v20  ;;  %v1651_v19 = vld [vmem:[%s2596_s7] sm:$0x3f]  ;;  %v1656_v20 = vpop.permute.xlu0 %1655 }
 0x415   : > { %v1175_v25 = vadd.f32 %v1879_v21, %v1165_v23  ;;  %v1178_v27 = vmax.f32 %v1176_v24, 0.0 }
 0x417   : > { %v1177_v26 = vmax.f32 %v1175_v25, 0.0 }
 0x419   : > { %2068 = vmatprep.mubr.msk.f32.mxu0 %vm524_vm2, %v1177_v26 }
 0x41a   : > { %2069 = vmatmul.mubr.msk.f32.vlgmr.msra.gmra.mxu0 %vm524_vm2, %v1178_v27 }
 0x41b   : > { %2083 = vmatpush3.msra.mxu0 %v1286_v29 }
 0x41c   : > { %2084 = vmatprep.subr.mxu0 %v1285_v31 }
 0x41d   : > { %2085 = vmatpush3.msra.mxu0 %v1285_v31 }
 0x41e   : > { %2086 = vmatprep.subr.mxu0 %v1284_v33 }
 0x41f   : > { %2087 = vmatpush3.msra.mxu0 %v1284_v33 }
 0x420   : > { %2088 = vmatprep.subr.mxu0 %v1283_v35 }
 0x421   : > { %2089 = vmatpush3.msra.mxu0 %v1283_v35 }
 0x422   : > { %2104 = vmatprep.subr.mxu0 %v1555_v52 }
 0x4da   : > { %v2070_v38 = vpop.f32.mrf.mxu0 }
 0x4db   : > { %v1270_v39 = vadd.f32 %v2070_v38, %v1881_v37 }
 0x4dc   : > { %v1264_v40 = vpop.f32.mrf.mxu0 }
 0x4dd   : > { %v1274_v41 = vadd.f32 %v1270_v39, %v2537_v2  ;;  %v1265_v42 = vadd.f32 %v1881_v37, %v1264_v40 }
 0x4df   : > { %1276 = vst.msk [vmem:[#allocation2 + $0x10] sm:$0xff] %vm524_vm2, %v1274_v41  ;;  %v1273_v43 = vadd.f32 %v1265_v42, %v2532_v63 }
 0x4e1   : > { %1275 = vst.msk [vmem:[#allocation2 + $0x8] sm:$0xff] %vm524_vm2, %v1273_v43 }
 0x4e6   : > { %v1278_v47 = vld [vmem:[#allocation2 + $0x10] sm:$0xff] }
 0x4e7   : > { %v1281_v51 = vld [vmem:[#allocation2 + $0x14] sm:$0xff] }
 0x4e8   : > { %v2553_v44 = vld [vmem:[#allocation2 + $0x8] sm:$0xff] }
 0x4e9   : > { %v1279_v45 = vld [vmem:[#allocation2 + $0x4] sm:$0xff]  ;;  %v1280_v46 = vld [vmem:[#allocation2 + $0xc] sm:$0xff]  ;;  %2079 = vmatprep.mubr.msk.f32.mxu1 %vm524_vm2, %v2553_v44 }
 0x4ea   : > { %2090 = vmatprep.mubr.msk.f32.mxu0 %vm524_vm2, %v1279_v45  ;;  %2080 = vmatmul.mubr.msk.f32.vlgmr.msra.gmra.mxu1 %vm524_vm2, %v1278_v47 }
 0x4eb   : > { %2091 = vmatmul.mubr.msk.f32.vlgmr.msra.gmra.mxu0 %vm524_vm2, %v1280_v46  ;;  %2094 = vmatpush3.msra.mxu1 %v1458_v36 }
 0x4ec   : > { %2101 = vmatprep.mubr.msk.f32.mxu1 %vm524_vm2, %v1280_v46  ;;  %2095 = vmatprep.subr.mxu1 %v1457_v48 }
 0x4ed   : > { %2096 = vmatpush3.msra.mxu1 %v1457_v48  ;;  %2105 = vmatpush3.msra.mxu0 %v1555_v52 }
 0x4ee   : > { %2097 = vmatprep.subr.mxu1 %v1456_v49  ;;  %2106 = vmatprep.subr.mxu0 %v1554_v53 }
 0x4ef   : > { %2098 = vmatpush3.msra.mxu1 %v1456_v49  ;;  %2107 = vmatpush3.msra.mxu0 %v1554_v53 }
 0x4f0   : > { %2099 = vmatprep.subr.mxu1 %v1455_v50  ;;  %2108 = vmatprep.subr.mxu0 %v1553_v54 }
 0x4f1   : > { %2100 = vmatpush3.msra.mxu1 %v1455_v50  ;;  %2109 = vmatpush3.msra.mxu0 %v1553_v54 }
 0x4f2   : > { %2102 = vmatmul.mubr.msk.f32.vlgmr.msra.gmra.mxu1 %vm524_vm2, %v1281_v51  ;;  %2115 = vmatprep.subr.mxu1 %v2348_v4 }
 0x4f3   : > { %2110 = vmatprep.subr.mxu0 %v1552_v55  ;;  %2119 = vmatprep.mubr.msk.f32.mxu1 %vm2349_vm3, %v2348_v4 }
 0x4f4   : > { %2111 = vmatpush3.msra.mxu0 %v1552_v55 }
 0x5aa   : > { %v2081_v56 = vpop.f32.mrf.mxu1 }
 0x5ab   : > { %v2092_v57 = vpop.f32.mrf.mxu0 }
 0x5ac   : > { %v1364_v58 = vpop.f32.mrf.mxu1  ;;  %v1451_v60 = vadd.f32 %v2092_v57, %v2081_v56 }
 0x5ad   : > { %v1445_v59 = vpop.f32.mrf.mxu0 }
 0x5ae   : > { %v1446_v62 = vadd.f32 %v1445_v59, %v1364_v58 }
 0x5b2   : > { %v2103_v61 = vpop.f32.mrf.mxu1 }
 0x5b3   : > { %v1538_v63 = vadd.f32 %v2103_v61, %v1451_v60 }
 0x5b4   : > { %v1528_v1 = vpop.f32.mrf.mxu1 }
 0x5b5   : > { %v1537_v2 = vadd.f32 %v1528_v1, %v1446_v62  ;;  %v1548_v3 = vadd.f32 %v1890_v0, %v1538_v63 }
 0x5b7   : > { %v1547_v5 = vadd.f32 %v1890_v0, %v1537_v2  ;;  %v1550_v7 = vmax.f32 %v1548_v3, 0.0 }
 0x5b9   : > { %v1549_v6 = vmax.f32 %v1547_v5, 0.0 }
 0x5bb   : > { %2112 = vmatprep.mubr.msk.f32.mxu0 %vm524_vm2, %v1549_v6 }
 0x5bc   : > { %2113 = vmatmul.mubr.msk.f32.vlgmr.msra.gmra.mxu0 %vm524_vm2, %v1550_v7 }
 0x67c   : > { %v2114_v11 = vpop.f32.mrf.mxu0 }
 0x67d   : > { %v1642_v12 = vadd.f32 %v2114_v11, %v1892_v10 }
 0x67e   : > { %v1636_v13 = vpop.f32.mrf.mxu0 }
 0x67f   : > { %v1646_v14 = vadd.f32 %v1642_v12, %v1278_v47  ;;  %v1637_v15 = vadd.f32 %v1892_v10, %v1636_v13 }
 0x681   : > { %1648 = vst.msk [vmem:[#allocation2 + $0x10] sm:$0xff] %vm524_vm2, %v1646_v14  ;;  %v1645_v16 = vadd.f32 %v1637_v15, %v2553_v44 }
 0x683   : > { %1647 = vst.msk [vmem:[#allocation2 + $0x8] sm:$0xff] %vm524_vm2, %v1645_v16 }
 0x688   : > { %v1650_v17 = vld [vmem:[#allocation2 + $0x10] sm:$0xff] }
 0x689   : > { %2116 = vmatpush3.xpose.msk.msra.mxu1 %vm524_vm2, %v1650_v17 }
 0x68a   : > { %2117 = vmatprep.subr.mxu1 %v2348_v4  ;;  %v1649_v18 = vld [vmem:[#allocation2 + $0x8] sm:$0xff] }
 0x68d   : > { %2118 = vmatpush3.xpose.msk.msra.mxu1 %vm524_vm2, %v1649_v18 }
 0x690   : > { %2120 = vmatmul.mubr.msk.f32.vlgmr.msra.gmra.mxu1 %vm524_vm2, %v1651_v19 }
 0x750   : > { %v1733_v21 = vpop.f32.mrf.mxu1 }
 0x751   : > { %v1734_v22 = vadd.f32 %v1733_v21, %v1656_v20 }
 0x752   : > { %v2121_v23 = vpop.f32.mrf.mxu1 }
 0x753   : > { %1738 = vst.msk [vmem:[%s396_s28] sm:$0x3f] %vm1737_vm4, %v1734_v22 }
 0x754 PF: > { %s22_s30 = sadd.s32 1, %s2337_s30  }
 0x755   : > { %p19_p2 = scmp.ge.s32.totalorder %s22_s30, 4  }
 0x757   :  { %21 = sbr.rel (!%p19_p2) target bundleno = 3 (0x3), region = 121 }
 0x75c   :  { %1758 = vsyncpa [#allocation4], 1 }
 0x75d   :  { %1760 = vsyncpa [#allocation4 + $0x1], 1 }
 0x75e   :  { %1761 = vsyncpa [#allocation6], 1 }
 0x75f   :  { %1762 = vsyncpa [#allocation9], 1 }

</bundles_post_ra>
